<compile_context>
chip_gen: v6e
topology: v6e:2x2x1
jax: 0.10.0
libtpu: 0.0.40
codegen_flags: <defaults>
</compile_context>

<pallas_src>
import functools
import math

import jax
import jax.numpy as jnp
from jax.experimental import pallas as pl
from jax.experimental.pallas import tpu as pltpu


# ---------------------------------------------------------------------------
# Fused MLP kernel: all layers in one kernel body, intermediates stay in VMEM.
# ---------------------------------------------------------------------------
def _apply_act(y, name):
    if name == "relu":
        return jnp.maximum(y, 0.0)
    if name == "tanh":
        return jnp.tanh(y)
    if name == "sigmoid":
        return jax.nn.sigmoid(y)
    if name is None or name == "none":
        return y
    raise ValueError(f"unsupported activation: {name}")


def _make_fused_kernel(n_layers, act_inner, act_out):
    """Kernel over refs: (x, w1, b1, w2, b2, ..., wN, bN, out)."""

    def kernel(*refs):
        x_ref = refs[0]
        o_ref = refs[-1]
        h = x_ref[...]                                   # (TB, Cin) in VMEM
        for i in range(n_layers):
            w = refs[1 + 2 * i][...]                     # (Cin_i, Cout_i)
            b = refs[2 + 2 * i][...]                     # (1, Cout_i)
            h = jnp.dot(h, w, preferred_element_type=jnp.float32) + b
            h = _apply_act(h, act_out if i == n_layers - 1 else act_inner)
        o_ref[...] = h.astype(o_ref.dtype)

    return kernel


def fused_mlp_forward(x, params, act_inner, act_out, *, tile_batch=None):
    """act_out( ... act_inner(x @ W1 + b1) ... @ WN + bN ) in ONE pallas_call.

    tile_batch=None  -> single-shot path (no grid, no pipeline machinery);
                        right choice for small / latency-bound batches.
    tile_batch=TB    -> batch-tiled path: grid over batch, weights resident in
                        VMEM across the grid, batch axis marked "parallel".
    """
    B, Cin = x.shape
    n_layers = len(params)
    out_dim = params[-1][0].shape[1]

    flat_params = []
    for w, b in params:
        flat_params.append(w)
        flat_params.append(b.reshape(1, -1))             # (1, Cout) for lane layout

    kernel = _make_fused_kernel(n_layers, act_inner, act_out)

    if tile_batch is None:
        # ---- small-batch path: whole problem in VMEM, no grid --------------
        return pl.pallas_call(
            kernel,
            out_shape=jax.ShapeDtypeStruct((B, out_dim), jnp.float32),
            in_specs=[pl.BlockSpec(memory_space=pltpu.MemorySpace.VMEM)]
            * (1 + len(flat_params)),
            out_specs=pl.BlockSpec(memory_space=pltpu.MemorySpace.VMEM),
        )(x, *flat_params)

    # ---- batch-tiled path ---------------------------------------------------
    # TODO(synk): for very large batches on v6e, sweep tile_batch up to ~2048
    # (raise vmem_limit_bytes); keep TB smaller on v7x (64 MiB VMEM).
    tb = int(tile_batch)
    assert tb % 8 == 0, "tile_batch must be a multiple of 8 (sublane alignment)"
    b_pad = ((B + tb - 1) // tb) * tb
    x_in = jnp.pad(x, ((0, b_pad - B), (0, 0))) if b_pad != B else x

    in_specs = [pl.BlockSpec((tb, Cin), lambda i: (i, 0))]      # stream activations
    for w, b in params:
        cin_i, cout_i = w.shape
        in_specs.append(pl.BlockSpec((cin_i, cout_i), lambda i: (0, 0)))  # resident
        in_specs.append(pl.BlockSpec((1, cout_i), lambda i: (0, 0)))      # resident

    out = pl.pallas_call(
        kernel,
        out_shape=jax.ShapeDtypeStruct((b_pad, out_dim), jnp.float32),
        grid=(b_pad // tb,),
        in_specs=in_specs,
        out_specs=pl.BlockSpec((tb, out_dim), lambda i: (i, 0)),
        compiler_params=pltpu.CompilerParams(
            dimension_semantics=("parallel",),           # shard batch across TCs (v7x)
        ),
    )(x_in, *flat_params)
    return out[:B] if b_pad != B else out


# ---------------------------------------------------------------------------
# LargeFeatureExtractor parameters + forward
# ---------------------------------------------------------------------------
def init_params(key, config):
    """Deterministic init mirroring torch.nn.Linear default (uniform +-1/sqrt(fan_in))."""
    dims = [config["rule_dim"]] + list(config["gp_feat_list"]) + [config["rbf_size"]]
    params = []
    for i in range(len(dims) - 1):
        key, kw, kb = jax.random.split(key, 3)
        fan_in, fan_out = dims[i], dims[i + 1]
        bound = 1.0 / math.sqrt(fan_in)
        # stored as (in, out) — i.e. the transpose of torch's (out, in) weight.
        w = jax.random.uniform(kw, (fan_in, fan_out), jnp.float32, -bound, bound)
        b = jax.random.uniform(kb, (fan_out,), jnp.float32, -bound, bound)
        params.append((w, b))
    return params


def large_feature_extractor_forward(params, x, config, *, tile_batch=None):
    return fused_mlp_forward(
        x, params, config["gp_feat_act"], config["gp_act_out"], tile_batch=tile_batch
    )


def reference_forward(params, x, config):
    """Pure-JAX reference for correctness check."""
    act_inner = config["gp_feat_act"]
    act_out = config["gp_act_out"]
    h = x
    for i, (w, b) in enumerate(params):
        act = act_out if i == len(params) - 1 else act_inner
        h = _apply_act(h @ w + b[None, :], act)
    return h


if __name__ == "__main__":
    config = {
        "rule_dim": 32,          # in_features
        "gp_feat_list": [64, 64],
        "rbf_size": 16,          # final feature dim fed to the GP RBF kernel
        "gp_feat_act": "relu",   # inner activation
        "gp_act_out": "tanh",    # output activation
    }

    key = jax.random.PRNGKey(0)
    key, kx_small, kx_big = jax.random.split(key, 3)
    params = init_params(key, config)

    # --- small-batch (latency) path: single fused call, no grid ---------------
    batch = 8
    x = jax.random.normal(kx_small, (batch, config["rule_dim"]), dtype=jnp.float32)
    out = large_feature_extractor_forward(params, x, config)
    out = jax.block_until_ready(out)
    ref = reference_forward(params, x, config)
    assert out.shape == (batch, config["rbf_size"])
    assert jnp.allclose(out, ref, atol=1e-5, rtol=1e-5), "small-batch mismatch vs reference"

    # --- batch-tiled path: weights resident, batch axis parallel --------------
    big_batch = 256
    xb = jax.random.normal(kx_big, (big_batch, config["rule_dim"]), dtype=jnp.float32)
    out_b = large_feature_extractor_forward(params, xb, config, tile_batch=128)
    out_b = jax.block_until_ready(out_b)
    ref_b = reference_forward(params, xb, config)
    assert out_b.shape == (big_batch, config["rbf_size"])
    assert jnp.allclose(out_b, ref_b, atol=1e-5, rtol=1e-5), "tiled mismatch vs reference"

    print("KERNEL_OK")
</pallas_src>

<mosaic_0001>
module attributes {stable_mosaic.version = 11 : i64} {
  func.func @kernel(%arg0: memref<8x32xf32, #tpu.memory_space<vmem>>, %arg1: memref<32x64xf32, #tpu.memory_space<vmem>>, %arg2: memref<1x64xf32, #tpu.memory_space<vmem>>, %arg3: memref<64x64xf32, #tpu.memory_space<vmem>>, %arg4: memref<1x64xf32, #tpu.memory_space<vmem>>, %arg5: memref<64x16xf32, #tpu.memory_space<vmem>>, %arg6: memref<1x16xf32, #tpu.memory_space<vmem>>, %arg7: memref<8x16xf32, #tpu.memory_space<vmem>>) attributes {dimension_semantics = [], scalar_prefetch = 0 : i64, scratch_operands = 0 : i64, tpu.core_type = #tpu.core_type<tc>} {
    %c0 = arith.constant 0 : index
    %c0_0 = arith.constant 0 : index
    %0 = vector.load %arg0[%c0, %c0_0] : memref<8x32xf32, #tpu.memory_space<vmem>>, vector<8x32xf32>
    %c0_1 = arith.constant 0 : index
    %c0_2 = arith.constant 0 : index
    %1 = vector.load %arg1[%c0_1, %c0_2] : memref<32x64xf32, #tpu.memory_space<vmem>>, vector<32x64xf32>
    %c0_3 = arith.constant 0 : index
    %c0_4 = arith.constant 0 : index
    %2 = vector.load %arg2[%c0_3, %c0_4] : memref<1x64xf32, #tpu.memory_space<vmem>>, vector<1x64xf32>
    %cst = arith.constant dense<0.000000e+00> : vector<8x64xf32>
    %3 = tpu.matmul %0, %1, %cst {dimension_numbers = #tpu.dot_dimension_numbers<[1], [0], [0], [1], [0, 0, 1, 1], [], []>} : vector<8x32xf32>, vector<32x64xf32>, vector<8x64xf32> -> vector<8x64xf32>
    %4 = vector.broadcast %2 : vector<1x64xf32> to vector<8x64xf32>
    %5 = arith.addf %3, %4 : vector<8x64xf32>
    %cst_5 = arith.constant 0.000000e+00 : f32
    %6 = vector.broadcast %cst_5 : f32 to vector<8x64xf32>
    %7 = arith.maximumf %5, %6 : vector<8x64xf32>
    %c0_6 = arith.constant 0 : index
    %c0_7 = arith.constant 0 : index
    %8 = vector.load %arg3[%c0_6, %c0_7] : memref<64x64xf32, #tpu.memory_space<vmem>>, vector<64x64xf32>
    %c0_8 = arith.constant 0 : index
    %c0_9 = arith.constant 0 : index
    %9 = vector.load %arg4[%c0_8, %c0_9] : memref<1x64xf32, #tpu.memory_space<vmem>>, vector<1x64xf32>
    %cst_10 = arith.constant dense<0.000000e+00> : vector<8x64xf32>
    %10 = tpu.matmul %7, %8, %cst_10 {dimension_numbers = #tpu.dot_dimension_numbers<[1], [0], [0], [1], [0, 0, 1, 1], [], []>} : vector<8x64xf32>, vector<64x64xf32>, vector<8x64xf32> -> vector<8x64xf32>
    %11 = vector.broadcast %9 : vector<1x64xf32> to vector<8x64xf32>
    %12 = arith.addf %10, %11 : vector<8x64xf32>
    %cst_11 = arith.constant 0.000000e+00 : f32
    %13 = vector.broadcast %cst_11 : f32 to vector<8x64xf32>
    %14 = arith.maximumf %12, %13 : vector<8x64xf32>
    %c0_12 = arith.constant 0 : index
    %c0_13 = arith.constant 0 : index
    %15 = vector.load %arg5[%c0_12, %c0_13] : memref<64x16xf32, #tpu.memory_space<vmem>>, vector<64x16xf32>
    %c0_14 = arith.constant 0 : index
    %c0_15 = arith.constant 0 : index
    %16 = vector.load %arg6[%c0_14, %c0_15] : memref<1x16xf32, #tpu.memory_space<vmem>>, vector<1x16xf32>
    %cst_16 = arith.constant dense<0.000000e+00> : vector<8x16xf32>
    %17 = tpu.matmul %14, %15, %cst_16 {dimension_numbers = #tpu.dot_dimension_numbers<[1], [0], [0], [1], [0, 0, 1, 1], [], []>} : vector<8x64xf32>, vector<64x16xf32>, vector<8x16xf32> -> vector<8x16xf32>
    %18 = vector.broadcast %16 : vector<1x16xf32> to vector<8x16xf32>
    %19 = arith.addf %17, %18 : vector<8x16xf32>
    %20 = math.tanh %19 : vector<8x16xf32>
    %c0_17 = arith.constant 0 : index
    %c0_18 = arith.constant 0 : index
    %21 = vector.load %arg7[%c0_17, %c0_18] : memref<8x16xf32, #tpu.memory_space<vmem>>, vector<8x16xf32>
    tpu.vector_store %arg7[%c0_17, %c0_18], %20 {strides = array<i32>} : memref<8x16xf32, #tpu.memory_space<vmem>>, vector<8x16xf32>,
    return
  }
}

</mosaic_0001>

<bundles_post_ra>
// kernel: tpu_custom_call.1
= control target key start
LH: loop header
LB: loop body
LE: loop exit
PB: predicated region body
PF: predicated region fallthrough
CT: control target
= control target key end

     0   :  { %12 = vsyncpa [#allocation3], 0  ;;  %s594_s0 = inlined_call_operand.vmem [shape: f32[8,32], index: 0, kind: input, shape index: {}]   ;;  %s595_s1 = inlined_call_operand.hbm [shape: f32[32,64], index: 1, kind: input, shape index: {}]   ;;  %s596_s2 = inlined_call_operand.vmem [shape: f32[1,64], index: 2, kind: input, shape index: {}]   ;;  %s597_s3 = inlined_call_operand.vmem [shape: f32[64,64], index: 3, kind: input, shape index: {}]   ;;  %s598_s4 = inlined_call_operand.vmem [shape: f32[1,64], index: 4, kind: input, shape index: {}]   ;;  %s599_s5 = inlined_call_operand.vmem [shape: f32[64,16], index: 5, kind: input, shape index: {}]   ;;  %s600_s6 = inlined_call_operand.vmem [shape: f32[1,16], index: 6, kind: input, shape index: {}]   ;;  %s601_s7 = inlined_call_operand.hbm [shape: f32[8,16], index: 7, kind: output, shape index: {}]  }
   0x1   :  { %13 = vsyncpa [#allocation4], 0  ;;  %s454_s24 = smov [#allocation2]  }
   0x2   :  { %s21_s25 = sshll.u32 %s454_s24, 4  ;;  %s22_s25 = int_to_ptr.vmem [resolvable:$true] %s21_s25 }
   0x3   :  { %s418_s26 = scalar_lea.vmem %s22_s25, 512  ;;  %p423_p1 = scmp.lt.s32.totalorder %s22_s25, %s22_s25 }
   0x4   :  { %p419_p0 = scmp.ne.s32.totalorder %s22_s25, %s418_s26  ;;  %p424_p2 = scmp.lt.s32.totalorder %s418_s26, %s418_s26 }
   0x6   :  { %p425_p3 = por %p424_p2, %p423_p1 }
   0x8   :  { %p426_p4 = pnand %p425_p3, %p419_p0 }
   0xa   :  { %429 = shalt.err (!%p426_p4)
}
   0xb   :  { %s455_s27 = smov 128   ;;  %s456_s28 = smov 8  }
   0xc   :  { %27 = dma.hbm_to_vmem [thread:$0]  %s595_s1, 512, %s22_s25, [#allocation3], %s455_s27, %s455_s27, %s456_s28  }
   0xd   :  { %450 = dma.done.wait [#allocation3], 512  }
   0xe   :  { %451 = vsyncadd [#allocation3], 4294966784  ;;  %v457_v0 = vmov 0.0   ;;  %vm458_vm0 = vmmov 0   ;;  %v45_v1 = vld [vmem:[#allocation2 + $0x18] sm:$0xff]  ;;  %v44_v2 = vld [vmem:[#allocation2 + $0x10] sm:$0xff] }
   0xf   :  { %353 = vmatprep.subr.mxu0 %v457_v0  ;;  %361 = vmatprep.mubr.msk.f32.mxu0 %vm458_vm0, %v457_v0  ;;  %v135_v3 = vld [vmem:[%s597_s3 + $0x38] sm:$0xff]  ;;  %v43_v4 = vld [vmem:[#allocation2 + $0x8] sm:$0xff]  ;;  %v134_v5 = vld [vmem:[%s597_s3 + $0x30] sm:$0xff]  ;;  %vm53_vm1 = vcmask 261120   ;;  %vm143_vm2 = vcmask 523264   ;;  %vm307_vm3 = vcmask 130048  }
  0x10   :  { %364 = vmatprep.subr.mxu1 %v457_v0  ;;  %380 = vmatprep.mubr.msk.f32.mxu1 %vm458_vm0, %v457_v0  ;;  %v133_v6 = vld [vmem:[%s597_s3 + $0x28] sm:$0xff]  ;;  %v42_v7 = vld [vmem:[#allocation2] sm:$0xff]  ;;  %v131_v10 = vld [vmem:[%s597_s3 + $0x18] sm:$0xff] }
  0x11   :  { %354 = vmatpush3.msra.mxu0 %v45_v1  ;;  %365 = vmatpush3.msra.mxu1 %v135_v3  ;;  %v41_v8 = vld [vmem:[%s594_s0] sm:$0xff]  ;;  %v130_v11 = vld [vmem:[%s597_s3 + $0x10] sm:$0xff]  ;;  %v129_v12 = vld [vmem:[%s597_s3 + $0x8] sm:$0xff] }
  0x12   :  { %355 = vmatprep.subr.mxu0 %v457_v0  ;;  %366 = vmatprep.subr.mxu1 %v457_v0  ;;  %v132_v9 = vld [vmem:[%s597_s3 + $0x20] sm:$0xff]  ;;  %v225_v14 = vld [vmem:[%s599_s5 + $0x38] sm:$0xff]  ;;  %v224_v15 = vld [vmem:[%s599_s5 + $0x30] sm:$0xff] }
  0x13   :  { %356 = vmatpush3.msra.mxu0 %v44_v2  ;;  %367 = vmatpush3.msra.mxu1 %v134_v5  ;;  %v128_v13 = vld [vmem:[%s597_s3] sm:$0xff]  ;;  %v223_v16 = vld [vmem:[%s599_s5 + $0x28] sm:$0xff]  ;;  %v221_v18 = vld [vmem:[%s599_s5 + $0x18] sm:$0xff] }
  0x14   :  { %357 = vmatprep.subr.mxu0 %v457_v0  ;;  %368 = vmatprep.subr.mxu1 %v457_v0  ;;  %v222_v17 = vld [vmem:[%s599_s5 + $0x20] sm:$0xff]  ;;  %v220_v24 = vld [vmem:[%s599_s5 + $0x10] sm:$0xff]  ;;  %v219_v25 = vld [vmem:[%s599_s5 + $0x8] sm:$0xff] }
  0x15   :  { %358 = vmatpush3.msra.mxu0 %v43_v4  ;;  %369 = vmatpush3.msra.mxu1 %v133_v6  ;;  %v324_v19 = vld [vmem:[%s596_s2] ss:$0 sm:$0xff] }
  0x16   :  { %359 = vmatprep.subr.mxu0 %v457_v0  ;;  %370 = vmatprep.subr.mxu1 %v457_v0  ;;  %v218_v26 = vld [vmem:[%s599_s5] sm:$0xff]  ;;  %s459_s5 = smov [#allocation5]  }
  0x17   :  { %360 = vmatpush3.msra.mxu0 %v42_v7  ;;  %371 = vmatpush3.msra.mxu1 %v132_v9  ;;  %v326_v27 = vld [vmem:[%s598_s4] ss:$0 sm:$0xff]  ;;  %s315_s19 = sshll.u32 %s459_s5, 4  ;;  %s316_s19 = int_to_ptr.vmem [resolvable:$true] %s315_s19 }
  0x18   :  { %362 = vmatmul.mubr.msk.f32.vlgmr.msra.gmra.mxu0 %vm53_vm1, %v41_v8  ;;  %372 = vmatprep.subr.mxu1 %v457_v0  ;;  %v328_v32 = vld [vmem:[%s600_s6] ss:$0 sm:$0xff]  ;;  %s430_s4 = scalar_lea.vmem %s316_s19, 128  ;;  %p435_p6 = scmp.lt.s32.totalorder %s316_s19, %s316_s19 }
  0x19   :  { %383 = vmatprep.subr.mxu0 %v457_v0  ;;  %373 = vmatpush3.msra.mxu1 %v131_v10  ;;  %p431_p5 = scmp.ne.s32.totalorder %s316_s19, %s430_s4  ;;  %p436_p7 = scmp.lt.s32.totalorder %s430_s4, %s430_s4 }
  0x1a   :  { %399 = vmatprep.mubr.msk.f32.mxu0 %vm458_vm0, %v457_v0  ;;  %374 = vmatprep.subr.mxu1 %v457_v0 }
  0x1b   :  { %375 = vmatpush3.msra.mxu1 %v130_v11  ;;  %384 = vmatpush3.msra.mxu0 %v225_v14  ;;  %p437_p8 = por %p436_p7, %p435_p6 }
  0x1c   :  { %376 = vmatprep.subr.mxu1 %v457_v0  ;;  %385 = vmatprep.subr.mxu0 %v457_v0 }
  0x1d   :  { %377 = vmatpush3.msra.mxu1 %v129_v12  ;;  %386 = vmatpush3.msra.mxu0 %v224_v15  ;;  %p438_p9 = pnand %p437_p8, %p431_p5 }
  0x1e   :  { %378 = vmatprep.subr.mxu1 %v457_v0  ;;  %387 = vmatprep.subr.mxu0 %v457_v0 }
  0x1f   :  { %379 = vmatpush3.msra.mxu1 %v128_v13  ;;  %388 = vmatpush3.msra.mxu0 %v223_v16 }
  0x20   :  { %389 = vmatprep.subr.mxu0 %v457_v0 }
  0x21   :  { %390 = vmatpush3.msra.mxu0 %v222_v17 }
  0x22   :  { %391 = vmatprep.subr.mxu0 %v457_v0 }
  0x23   :  { %392 = vmatpush3.msra.mxu0 %v221_v18 }
  0x24   :  { %393 = vmatprep.subr.mxu0 %v457_v0 }
  0x25   :  { %394 = vmatpush3.msra.mxu0 %v220_v24 }
  0x26   :  { %395 = vmatprep.subr.mxu0 %v457_v0 }
  0x27   :  { %396 = vmatpush3.msra.mxu0 %v219_v25 }
  0x28   :  { %397 = vmatprep.subr.mxu0 %v457_v0 }
  0x29   :  { %398 = vmatpush3.msra.mxu0 %v218_v26 }
  0xd8   :  { %v123_v20 = vpop.f32.mrf.mxu0 }
  0xd9   :  { %v124_v21 = vadd.f32 %v324_v19, %v123_v20 }
  0xda   :  { %v363_v22 = vpop.f32.mrf.mxu0 }
  0xdb   :  { %v127_v23 = vmax.f32 %v124_v21, 0.0 }
  0xdd   :  { %381 = vmatmul.mubr.msk.f32.vlgmr.msra.gmra.mxu1 %vm143_vm2, %v127_v23 }
 0x19d   :  { %v213_v28 = vpop.f32.mrf.mxu1 }
 0x19e   :  { %v214_v29 = vadd.f32 %v326_v27, %v213_v28 }
 0x19f   :  { %v382_v30 = vpop.f32.mrf.mxu1 }
 0x1a0   :  { %v217_v31 = vmax.f32 %v214_v29, 0.0 }
 0x1a2   :  { %400 = vmatmul.mubr.msk.f32.vlgmr.msra.gmra.mxu0 %vm143_vm2, %v217_v31 }
 0x262   :  { %v302_v33 = vpop.f32.mrf.mxu0 }
 0x263   :  { %v303_v34 = vadd.f32 %v328_v32, %v302_v33 }
 0x264   :  { %v401_v35 = vpop.f32.mrf.mxu0 }
 0x265   :  { %408 = vtanh.f32 %v303_v34 }
 0x272   :  { %v409_v36 = vpop.eup %408 }
 0x273   :  { %308 = vst.msk [vmem:[#allocation5] sm:$0xff] %vm307_vm3, %v409_v36 }
 0x274   :  { %441 = shalt.err (!%p438_p9)
}
 0x275   :  { %318 = dma.vmem_to_hbm [thread:$0]  %s316_s19, 128, %s601_s7, [#allocation4]  }
 0x276   :  { %452 = dma.done.wait [#allocation4], 128  }
 0x277   :  { %453 = vsyncadd [#allocation4], 4294967168 }
 0x278   :  { %322 = vsyncpa [#allocation3], 1 }
 0x279   :  { %323 = vsyncpa [#allocation4], 1 }

</bundles_post_ra>
